<compile_context>
chip_gen: v7x
topology: tpu7x:2x2x1
jax: 0.10.0
libtpu: 0.0.40
codegen_flags: <defaults>
</compile_context>

<pallas_src>
import functools
import math

import jax
import jax.numpy as jnp
from jax import lax
from jax.experimental import pallas as pl
from jax.experimental.pallas import tpu as pltpu


def _flash_head_kernel(xq_ref, xkv_ref, w_ref, o_ref,
                       q_sc, m_sc, l_sc, acc_sc,
                       *, scale, tq, tk, d_head, mxu_dtype, approx_recip):
    # xq_ref: (1, tq, D)  xkv_ref: (1, tk, D)  w_ref: (D, 3H)  o_ref: (1, tq, H)
    qi = pl.program_id(1)
    ki = pl.program_id(2)
    H = d_head
    q_start = qi * tq
    k_start = ki * tk

    @pl.when(ki == 0)
    def _init():
        m_sc[...] = jnp.full_like(m_sc, -jnp.inf)
        l_sc[...] = jnp.zeros_like(l_sc)
        acc_sc[...] = jnp.zeros_like(acc_sc)
        # Q projection once per (batch, q-tile); cached in VMEM scratch.
        xq = xq_ref[0].astype(mxu_dtype)                       # (tq, D)
        wq = w_ref[:, 0:H].astype(mxu_dtype)                   # (D, H)
        q = jnp.dot(xq, wq, preferred_element_type=jnp.float32)
        q_sc[...] = q.astype(q_sc.dtype)

    # Causal skip: kv tiles strictly above the diagonal contribute nothing.
    @pl.when(k_start <= q_start + (tq - 1))
    def _compute():
        xkv = xkv_ref[0].astype(mxu_dtype)                     # (tk, D)
        wkv = w_ref[:, H:3 * H].astype(mxu_dtype)              # (D, 2H) fused K|V
        kv = jnp.dot(xkv, wkv, preferred_element_type=jnp.float32)  # (tk, 2H)
        k = kv[:, 0:H].astype(mxu_dtype)
        v = kv[:, H:2 * H].astype(mxu_dtype)

        q = q_sc[...].astype(mxu_dtype)
        # Contract the last dims directly (no k.T materialization / XLU transpose).
        s = lax.dot_general(q, k, (((1,), (1,)), ((), ())),
                            preferred_element_type=jnp.float32) * scale  # (tq, tk)

        # Causal mask with global indices; large finite negative avoids NaN from
        # exp(-inf - (-inf)) on fully-masked rows of partially-masked tiles.
        row = q_start + lax.broadcasted_iota(jnp.int32, (tq, tk), 0)
        col = k_start + lax.broadcasted_iota(jnp.int32, (tq, tk), 1)
        s = jnp.where(col <= row, s, -1e30)

        # Online softmax update (f32 elementwise math: safe on v5e too).
        m_prev = m_sc[...]
        m_new = jnp.maximum(m_prev, jnp.max(s, axis=-1, keepdims=True))
        alpha = jnp.exp(m_prev - m_new)
        p = jnp.exp(s - m_new)
        l_sc[...] = alpha * l_sc[...] + jnp.sum(p, axis=-1, keepdims=True)
        acc_sc[...] = alpha * acc_sc[...] + jnp.dot(
            p.astype(mxu_dtype), v, preferred_element_type=jnp.float32)
        m_sc[...] = m_new

    @pl.when(ki == pl.num_programs(2) - 1)
    def _finalize():
        # TODO(synk): training-mode dropout on the attention pattern is not
        # implemented (eval mode => identity), matching the reference forward.
        inv_l = pl.reciprocal(l_sc[...], approx=approx_recip)
        o_ref[0] = (acc_sc[...] * inv_l).astype(o_ref.dtype)


def _pick_tile(total, want):
    """Largest tile <= want that divides `total` and is 8-aligned (or == total)."""
    t = min(want, total)
    while t > 1 and (total % t != 0 or (t % 8 != 0 and t != total)):
        t -= 1
    return max(t, 1)


def my_attention_head(x, wq, wk, wv, d_model, *, tq=512, tk=512, precise=False):
    """x: (B, T, d_model); wq/wk/wv: (d_model, d_head). Returns (B, T, d_head) f32."""
    B, T, D = x.shape
    H = wq.shape[1]
    scale = 1.0 / math.sqrt(float(d_model))   # module uses 1/sqrt(d_model), not d_head

    tq = _pick_tile(T, tq)
    tk = _pick_tile(T, tk)
    n_q = T // tq
    n_k = T // tk

    mxu_dtype = jnp.float32 if precise else jnp.bfloat16
    approx_recip = not precise

    # Fused projection weight (D, 3H): one weight DMA, wider MXU N dimension.
    w_qkv = jnp.concatenate([wq, wk, wv], axis=1)

    kernel = functools.partial(
        _flash_head_kernel, scale=scale, tq=tq, tk=tk, d_head=H,
        mxu_dtype=mxu_dtype, approx_recip=approx_recip)

    flops = 2 * B * T * D * 3 * H + 2 * 2 * B * T * T * H
    bytes_accessed = (2 * x.size * x.dtype.itemsize
                      + w_qkv.size * w_qkv.dtype.itemsize
                      + B * T * H * 4)

    grid_spec = pltpu.PrefetchScalarGridSpec(
        num_scalar_prefetch=0,
        grid=(B, n_q, n_k),
        in_specs=[
            pl.BlockSpec((1, tq, D), lambda b, qi, ki: (b, qi, 0)),   # x for Q tile
            pl.BlockSpec((1, tk, D), lambda b, qi, ki: (b, ki, 0)),   # x for K/V tile
            pl.BlockSpec((D, 3 * H), lambda b, qi, ki: (0, 0)),       # fused weights (resident)
        ],
        out_specs=pl.BlockSpec((1, tq, H), lambda b, qi, ki: (b, qi, 0)),
        scratch_shapes=[
            pltpu.VMEM((tq, H), mxu_dtype),     # cached Q tile
            pltpu.VMEM((tq, 1), jnp.float32),   # running max
            pltpu.VMEM((tq, 1), jnp.float32),   # running sum
            pltpu.VMEM((tq, H), jnp.float32),   # output accumulator
        ],
    )

    return pl.pallas_call(
        kernel,
        out_shape=jax.ShapeDtypeStruct((B, T, H), jnp.float32),
        grid_spec=grid_spec,
        compiler_params=pltpu.CompilerParams(
            dimension_semantics=("parallel", "parallel", "arbitrary"),
            # 48 MiB: safe under v7x's 64 MiB physical VMEM, plenty on v5e/v6e.
            vmem_limit_bytes=48 << 20,
        ),
        cost_estimate=pl.CostEstimate(
            flops=int(flops),
            transcendentals=int(B * T * T),
            bytes_accessed=int(bytes_accessed),
        ),
    )(x, x, w_qkv)


def reference(x, wq, wk, wv, d_model):
    """Pure-JAX reference mirroring the PyTorch forward (eval mode)."""
    scale = 1.0 / jnp.sqrt(jnp.float32(d_model))
    q = x @ wq
    k = x @ wk
    v = x @ wv
    scores = jnp.einsum("bqh,bkh->bqk", q, k) * scale
    T = x.shape[1]
    mask = jnp.tril(jnp.ones((T, T), dtype=bool))
    scores = jnp.where(mask[None], scores, -jnp.inf)
    attn = jax.nn.softmax(scores, axis=-1)
    return attn @ v


if __name__ == "__main__":
    B, T, D_MODEL, D_HEAD = 2, 8, 32, 16

    key = jax.random.PRNGKey(0)
    kx, kq, kk, kv = jax.random.split(key, 4)

    x = jax.random.normal(kx, (B, T, D_MODEL), dtype=jnp.float32)
    bound = 1.0 / (D_MODEL ** 0.5)
    wq = jax.random.uniform(kq, (D_MODEL, D_HEAD), jnp.float32, -bound, bound)
    wk = jax.random.uniform(kk, (D_MODEL, D_HEAD), jnp.float32, -bound, bound)
    wv = jax.random.uniform(kv, (D_MODEL, D_HEAD), jnp.float32, -bound, bound)

    ref = reference(x, wq, wk, wv, D_MODEL)

    # Fast path (bf16 MXU inputs + approx reciprocal): bf16-level tolerance.
    out_fast = jax.block_until_ready(my_attention_head(x, wq, wk, wv, D_MODEL))
    assert out_fast.shape == (B, T, D_HEAD)
    assert jnp.allclose(out_fast, ref, atol=5e-2, rtol=5e-2), "bf16 path mismatch"

    # Precise path (f32 MXU inputs, exact reciprocal): tight tolerance.
    out_precise = jax.block_until_ready(
        my_attention_head(x, wq, wk, wv, D_MODEL, precise=True))
    assert out_precise.shape == (B, T, D_HEAD)
    assert jnp.allclose(out_precise, ref, atol=1e-4, rtol=1e-4), "f32 path mismatch"

    print("KERNEL_OK")
</pallas_src>

<mosaic_0001>
module attributes {stable_mosaic.version = 11 : i64} {
  func.func @_flash_head_kernel(%arg0: i32, %arg1: i32, %arg2: i32, %arg3: memref<1x8x32xf32, #tpu.memory_space<vmem>>, %arg4: memref<1x8x32xf32, #tpu.memory_space<vmem>>, %arg5: memref<32x48xf32, #tpu.memory_space<vmem>>, %arg6: memref<1x8x16xf32, #tpu.memory_space<vmem>>, %arg7: memref<8x16xbf16, #tpu.memory_space<vmem>>, %arg8: memref<8x1xf32, #tpu.memory_space<vmem>>, %arg9: memref<8x1xf32, #tpu.memory_space<vmem>>, %arg10: memref<8x16xf32, #tpu.memory_space<vmem>>) attributes {dimension_semantics = [#tpu.dimension_semantics<parallel>, #tpu.dimension_semantics<parallel>, #tpu.dimension_semantics<arbitrary>], iteration_bounds = array<i64: 2, 1, 1>, scalar_prefetch = 0 : i64, scratch_operands = 4 : i64, tpu.core_type = #tpu.core_type<tc>, window_params = [{transform_indices = @transform_0, window_bounds = array<i64: 1, 8, 32>}, {transform_indices = @transform_1, window_bounds = array<i64: 1, 8, 32>}, {pipeline_mode = #tpu.pipeline_mode<synchronous>, transform_indices = @transform_2, window_bounds = array<i64: 32, 48>}, {transform_indices = @transform_3, window_bounds = array<i64: 1, 8, 16>}]} {
    %c8_i32 = arith.constant 8 : i32
    %0 = arith.muli %arg1, %c8_i32 : i32
    %c8_i32_0 = arith.constant 8 : i32
    %1 = arith.muli %arg2, %c8_i32_0 : i32
    %c0_i32 = arith.constant 0 : i32
    %2 = arith.cmpi eq, %arg2, %c0_i32 : i32
    %3 = arith.extui %2 : i1 to i32
    %c0_i32_1 = arith.constant 0 : i32
    %4 = arith.cmpi ne, %3, %c0_i32_1 : i32
    scf.if %4 {
      %cst = arith.constant 0xFF800000 : f32
      %12 = vector.broadcast %cst : f32 to vector<8x1xf32>
      %c0 = arith.constant 0 : index
      %c0_5 = arith.constant 0 : index
      %13 = vector.load %arg8[%c0, %c0_5] : memref<8x1xf32, #tpu.memory_space<vmem>>, vector<8x1xf32>
      tpu.vector_store %arg8[%c0, %c0_5], %12 {strides = array<i32>} : memref<8x1xf32, #tpu.memory_space<vmem>>, vector<8x1xf32>,
      %cst_6 = arith.constant 0.000000e+00 : f32
      %14 = vector.broadcast %cst_6 : f32 to vector<8x1xf32>
      %c0_7 = arith.constant 0 : index
      %c0_8 = arith.constant 0 : index
      %15 = vector.load %arg9[%c0_7, %c0_8] : memref<8x1xf32, #tpu.memory_space<vmem>>, vector<8x1xf32>
      tpu.vector_store %arg9[%c0_7, %c0_8], %14 {strides = array<i32>} : memref<8x1xf32, #tpu.memory_space<vmem>>, vector<8x1xf32>,
      %cst_9 = arith.constant 0.000000e+00 : f32
      %16 = vector.broadcast %cst_9 : f32 to vector<8x16xf32>
      %c0_10 = arith.constant 0 : index
      %c0_11 = arith.constant 0 : index
      %17 = vector.load %arg10[%c0_10, %c0_11] : memref<8x16xf32, #tpu.memory_space<vmem>>, vector<8x16xf32>
      tpu.vector_store %arg10[%c0_10, %c0_11], %16 {strides = array<i32>} : memref<8x16xf32, #tpu.memory_space<vmem>>, vector<8x16xf32>,
      %c0_12 = arith.constant 0 : index
      %c0_13 = arith.constant 0 : index
      %c0_14 = arith.constant 0 : index
      %18 = vector.load %arg3[%c0_12, %c0_13, %c0_14] : memref<1x8x32xf32, #tpu.memory_space<vmem>>, vector<1x8x32xf32>
      %19 = vector.shape_cast %18 : vector<1x8x32xf32> to vector<8x32xf32>
      %20 = arith.truncf %19 : vector<8x32xf32> to vector<8x32xbf16>
      %c0_15 = arith.constant 0 : index
      %c0_16 = arith.constant 0 : index
      %21 = vector.load %arg5[%c0_15, %c0_16] : memref<32x48xf32, #tpu.memory_space<vmem>>, vector<32x16xf32>
      %22 = arith.truncf %21 : vector<32x16xf32> to vector<32x16xbf16>
      %cst_17 = arith.constant dense<0.000000e+00> : vector<8x16xf32>
      %23 = tpu.matmul %20, %22, %cst_17 {dimension_numbers = #tpu.dot_dimension_numbers<[1], [0], [0], [1], [0, 0, 1, 1], [], []>} : vector<8x32xbf16>, vector<32x16xbf16>, vector<8x16xf32> -> vector<8x16xf32>
      %24 = arith.truncf %23 : vector<8x16xf32> to vector<8x16xbf16>
      %c0_18 = arith.constant 0 : index
      %c0_19 = arith.constant 0 : index
      %25 = vector.load %arg7[%c0_18, %c0_19] : memref<8x16xbf16, #tpu.memory_space<vmem>>, vector<8x16xbf16>
      tpu.vector_store %arg7[%c0_18, %c0_19], %24 {strides = array<i32>} : memref<8x16xbf16, #tpu.memory_space<vmem>>, vector<8x16xbf16>,
    } else {
    }
    %c7_i32 = arith.constant 7 : i32
    %5 = arith.addi %0, %c7_i32 : i32
    %6 = arith.cmpi sle, %1, %5 : i32
    %7 = arith.extui %6 : i1 to i32
    %c0_i32_2 = arith.constant 0 : i32
    %8 = arith.cmpi ne, %7, %c0_i32_2 : i32
    scf.if %8 {
      %c0 = arith.constant 0 : index
      %c0_5 = arith.constant 0 : index
      %c0_6 = arith.constant 0 : index
      %12 = vector.load %arg4[%c0, %c0_5, %c0_6] : memref<1x8x32xf32, #tpu.memory_space<vmem>>, vector<1x8x32xf32>
      %13 = vector.shape_cast %12 : vector<1x8x32xf32> to vector<8x32xf32>
      %14 = arith.truncf %13 : vector<8x32xf32> to vector<8x32xbf16>
      %c0_7 = arith.constant 0 : index
      %c16 = arith.constant 16 : index
      %15 = vector.load %arg5[%c0_7, %c16] : memref<32x48xf32, #tpu.memory_space<vmem>>, vector<32x32xf32>
      %16 = arith.truncf %15 : vector<32x32xf32> to vector<32x32xbf16>
      %cst = arith.constant dense<0.000000e+00> : vector<8x32xf32>
      %17 = tpu.matmul %14, %16, %cst {dimension_numbers = #tpu.dot_dimension_numbers<[1], [0], [0], [1], [0, 0, 1, 1], [], []>} : vector<8x32xbf16>, vector<32x32xbf16>, vector<8x32xf32> -> vector<8x32xf32>
      %18 = vector.extract_strided_slice %17 {offsets = [0, 0], sizes = [8, 16], strides = [1, 1]} : vector<8x32xf32> to vector<8x16xf32>
      %19 = arith.truncf %18 : vector<8x16xf32> to vector<8x16xbf16>
      %20 = vector.extract_strided_slice %17 {offsets = [0, 16], sizes = [8, 16], strides = [1, 1]} : vector<8x32xf32> to vector<8x16xf32>
      %21 = arith.truncf %20 : vector<8x16xf32> to vector<8x16xbf16>
      %c0_8 = arith.constant 0 : index
      %c0_9 = arith.constant 0 : index
      %22 = vector.load %arg7[%c0_8, %c0_9] : memref<8x16xbf16, #tpu.memory_space<vmem>>, vector<8x16xbf16>
      %cst_10 = arith.constant dense<0.000000e+00> : vector<8x8xf32>
      %23 = tpu.matmul %22, %19, %cst_10 {dimension_numbers = #tpu.dot_dimension_numbers<[1], [1], [0], [0], [0, 0, 1, 0], [], []>} : vector<8x16xbf16>, vector<8x16xbf16>, vector<8x8xf32> -> vector<8x8xf32>
      %cst_11 = arith.constant 0.176776692 : f32
      %24 = vector.broadcast %cst_11 : f32 to vector<8x8xf32>
      %25 = arith.mulf %23, %24 : vector<8x8xf32>
      %26 = tpu.iota {dimensions = array<i32: 0>} : vector<8x8xi32>
      %27 = vector.broadcast %0 : i32 to vector<8x8xi32>
      %28 = arith.addi %27, %26 : vector<8x8xi32>
      %29 = tpu.iota {dimensions = array<i32: 1>} : vector<8x8xi32>
      %30 = vector.broadcast %1 : i32 to vector<8x8xi32>
      %31 = arith.addi %30, %29 : vector<8x8xi32>
      %32 = arith.cmpi sle, %31, %28 : vector<8x8xi32>
      %cst_12 = arith.constant -1.000000e+30 : f32
      %33 = vector.broadcast %cst_12 : f32 to vector<8x8xf32>
      %34 = arith.select %32, %25, %33 : vector<8x8xi1>, vector<8x8xf32>
      %c0_13 = arith.constant 0 : index
      %c0_14 = arith.constant 0 : index
      %35 = vector.load %arg8[%c0_13, %c0_14] : memref<8x1xf32, #tpu.memory_space<vmem>>, vector<8x1xf32>
      %cst_15 = arith.constant dense<0xFF800000> : vector<8xf32>
      %36 = vector.multi_reduction <maximumf>, %34, %cst_15 [1] : vector<8x8xf32> to vector<8xf32>
      %37 = vector.shape_cast %36 : vector<8xf32> to vector<8x1xf32>
      %38 = arith.maximumf %35, %37 : vector<8x1xf32>
      %39 = arith.subf %35, %38 : vector<8x1xf32>
      %40 = math.exp %39 : vector<8x1xf32>
      %41 = vector.broadcast %38 : vector<8x1xf32> to vector<8x8xf32>
      %42 = arith.subf %34, %41 : vector<8x8xf32>
      %43 = math.exp %42 : vector<8x8xf32>
      %c0_16 = arith.constant 0 : index
      %c0_17 = arith.constant 0 : index
      %44 = vector.load %arg9[%c0_16, %c0_17] : memref<8x1xf32, #tpu.memory_space<vmem>>, vector<8x1xf32>
      %45 = arith.mulf %40, %44 : vector<8x1xf32>
      %cst_18 = arith.constant dense<0.000000e+00> : vector<8xf32>
      %46 = vector.multi_reduction <add>, %43, %cst_18 [1] : vector<8x8xf32> to vector<8xf32>
      %47 = vector.shape_cast %46 : vector<8xf32> to vector<8x1xf32>
      %48 = arith.addf %45, %47 : vector<8x1xf32>
      %c0_19 = arith.constant 0 : index
      %c0_20 = arith.constant 0 : index
      %49 = vector.load %arg9[%c0_19, %c0_20] : memref<8x1xf32, #tpu.memory_space<vmem>>, vector<8x1xf32>
      tpu.vector_store %arg9[%c0_19, %c0_20], %48 {strides = array<i32>} : memref<8x1xf32, #tpu.memory_space<vmem>>, vector<8x1xf32>,
      %c0_21 = arith.constant 0 : index
      %c0_22 = arith.constant 0 : index
      %50 = vector.load %arg10[%c0_21, %c0_22] : memref<8x16xf32, #tpu.memory_space<vmem>>, vector<8x16xf32>
      %51 = vector.broadcast %40 : vector<8x1xf32> to vector<8x16xf32>
      %52 = arith.mulf %51, %50 : vector<8x16xf32>
      %53 = arith.truncf %43 : vector<8x8xf32> to vector<8x8xbf16>
      %cst_23 = arith.constant dense<0.000000e+00> : vector<8x16xf32>
      %54 = tpu.matmul %53, %21, %cst_23 {dimension_numbers = #tpu.dot_dimension_numbers<[1], [0], [0], [1], [0, 0, 1, 1], [], []>} : vector<8x8xbf16>, vector<8x16xbf16>, vector<8x16xf32> -> vector<8x16xf32>
      %55 = arith.addf %52, %54 : vector<8x16xf32>
      %c0_24 = arith.constant 0 : index
      %c0_25 = arith.constant 0 : index
      %56 = vector.load %arg10[%c0_24, %c0_25] : memref<8x16xf32, #tpu.memory_space<vmem>>, vector<8x16xf32>
      tpu.vector_store %arg10[%c0_24, %c0_25], %55 {strides = array<i32>} : memref<8x16xf32, #tpu.memory_space<vmem>>, vector<8x16xf32>,
      %c0_26 = arith.constant 0 : index
      %c0_27 = arith.constant 0 : index
      %57 = vector.load %arg8[%c0_26, %c0_27] : memref<8x1xf32, #tpu.memory_space<vmem>>, vector<8x1xf32>
      tpu.vector_store %arg8[%c0_26, %c0_27], %38 {strides = array<i32>} : memref<8x1xf32, #tpu.memory_space<vmem>>, vector<8x1xf32>,
    } else {
    }
    %c0_i32_3 = arith.constant 0 : i32
    %9 = arith.cmpi eq, %arg2, %c0_i32_3 : i32
    %10 = arith.extui %9 : i1 to i32
    %c0_i32_4 = arith.constant 0 : i32
    %11 = arith.cmpi ne, %10, %c0_i32_4 : i32
    scf.if %11 {
      %c0 = arith.constant 0 : index
      %c0_5 = arith.constant 0 : index
      %12 = vector.load %arg9[%c0, %c0_5] : memref<8x1xf32, #tpu.memory_space<vmem>>, vector<8x1xf32>
      %13 = tpu.reciprocal %12 {approx = true} : vector<8x1xf32> -> vector<8x1xf32>
      %c0_6 = arith.constant 0 : index
      %c0_7 = arith.constant 0 : index
      %14 = vector.load %arg10[%c0_6, %c0_7] : memref<8x16xf32, #tpu.memory_space<vmem>>, vector<8x16xf32>
      %15 = vector.broadcast %13 : vector<8x1xf32> to vector<8x16xf32>
      %16 = arith.mulf %14, %15 : vector<8x16xf32>
      %c0_8 = arith.constant 0 : index
      %c0_9 = arith.constant 0 : index
      %c0_10 = arith.constant 0 : index
      %17 = vector.load %arg6[%c0_8, %c0_9, %c0_10] : memref<1x8x16xf32, #tpu.memory_space<vmem>>, vector<1x8x16xf32>
      %18 = vector.shape_cast %17 : vector<1x8x16xf32> to vector<8x16xf32>
      %19 = vector.shape_cast %16 : vector<8x16xf32> to vector<1x8x16xf32>
      tpu.vector_store %arg6[%c0_8, %c0_9, %c0_10], %19 {strides = array<i32>} : memref<1x8x16xf32, #tpu.memory_space<vmem>>, vector<1x8x16xf32>,
    } else {
    }
    return
  }
  func.func @transform_0(%arg0: i32, %arg1: i32, %arg2: i32) -> (i32, i32, i32) {
    %c0_i32 = arith.constant 0 : i32
    %c0_i32_0 = arith.constant 0 : i32
    return %arg0, %arg1, %c0_i32 : i32, i32, i32
  }
  func.func @transform_1(%arg0: i32, %arg1: i32, %arg2: i32) -> (i32, i32, i32) {
    %c0_i32 = arith.constant 0 : i32
    %c0_i32_0 = arith.constant 0 : i32
    return %arg0, %arg2, %c0_i32 : i32, i32, i32
  }
  func.func @transform_2(%arg0: i32, %arg1: i32, %arg2: i32) -> (i32, i32) {
    %c0_i32 = arith.constant 0 : i32
    %c0_i32_0 = arith.constant 0 : i32
    %c0_i32_1 = arith.constant 0 : i32
    return %c0_i32, %c0_i32_0 : i32, i32
  }
  func.func @transform_3(%arg0: i32, %arg1: i32, %arg2: i32) -> (i32, i32, i32) {
    %c0_i32 = arith.constant 0 : i32
    %c0_i32_0 = arith.constant 0 : i32
    return %arg0, %arg1, %c0_i32 : i32, i32, i32
  }
}

</mosaic_0001>

<bundles_post_ra>
// kernel: tpu_custom_call.1
= control target key start
LH: loop header
LB: loop body
LE: loop exit
PB: predicated region body
PF: predicated region fallthrough
CT: control target
= control target key end

     0   :  { %s1323_s0 = inlined_call_operand.hbm [shape: f32[2,8,32], index: 0, kind: input, shape index: {}]   ;;  %s1324_s1 = inlined_call_operand.hbm [shape: f32[2,8,32], index: 1, kind: input, shape index: {}]   ;;  %s1325_s2 = inlined_call_operand.hbm [shape: f32[32,48], index: 2, kind: input, shape index: {}]   ;;  %s1326_s3 = inlined_call_operand.hbm [shape: f32[2,8,16], index: 3, kind: output, shape index: {}]  }
   0x1   :  { %1332 = sst [smem:[#allocation18_spill]] %s1325_s2 }
   0x2   :  { %8 = vsyncpa [#allocation7], 0 }
   0x3   :  { %10 = vsyncpa [#allocation7 + $0x1], 0 }
   0x4   :  { %11 = vsyncpa [#allocation10], 0 }
   0x5   :  { %13 = vsyncpa [#allocation10 + $0x1], 0 }
   0x6   :  { %14 = vsyncpa [#allocation8], 0 }
   0x7   :  { %16 = vsyncpa [#allocation8 + $0x1], 0  ;;  %s1051_s12 = smov 0   ;;  %s1053_s13 = smov 0  }
   0x8   :  { %s1055_s14 = smov 0   ;;  %s1057_s15 = smov 0  }
   0x9   :  { %s1059_s16 = smov 0   ;;  %s1061_s17 = smov 0  }
   0xa LB: > { %s1082_s18 = sadd.s32 4294967295, %s1018_s17   ;;  %s688_s19 = sadd.s32 4294967294, %s1018_s17   ;;  %s1018_s17 = sphi %s1061_s17, %s22_s17   ;;  %s1014_s16 = sphi %s1059_s16, %s1355_s16   ;;  %s1010_s15 = sphi %s1057_s15, %s1354_s15   ;;  %s1006_s14 = sphi %s1055_s14, %s1353_s14   ;;  %s1002_s13 = sphi %s1053_s13, %s1352_s13   ;;  %s998_s12 = sphi %s1051_s12, %s1351_s12  }
   0xb   : > { %p63_p0 = scmp.ne.s32.totalorder %s1002_s13, %s998_s12  ;;  %p1327_p1 = scmp.eq.s32.totalorder %s1082_s18, 0 }
   0xc   : > { %p144_p3 = scmp.eq.s32.totalorder %s688_s19, 1  ;;  %p689_p5 = scmp.ge.s32.totalorder %s1018_s17, 1 }
   0xd   : > { %p1091_p4 = por %p1327_p1, %p63_p0  ;;  %p151_p7 = scmp.lt.s32.totalorder %s1018_s17, 3 }
   0xe   : > { %p1096_p6 = por %p144_p3, %p63_p0  ;;  %s1020_s23 = smov [#allocation11]  }
   0xf   : > { %s1333_s20 = scalar_select %p1091_p4, 1, 0 }
  0x10   : > { %s1334_s21 = scalar_select %p1096_p6, 1, 0 }
  0x11   : > { %p1101_p8 = pnand %p689_p5, %p151_p7  ;;  %s163_s24 = sshll.u32 %s1020_s23, 4  ;;  %s164_s24 = int_to_ptr.vmem [resolvable:$true] %s163_s24 }
  0x12   : > { %s41_s26 = sadd.s32 1, %s1014_s16  ;;  %s1337_s2 = sld [smem:[#allocation18_spill]] }
  0x13   : > { %s1335_s22 = scalar_select %p1101_p8, 1, 0 }
  0x14   : > { %p757_p9 = pneg %p1101_p8 }
  0x16   : > { %p1110_p11 = pnand %p757_p9, %p1327_p1 }
  0x18   : > { %s840_s29 = scalar_lea.hbm %s1337_s2, 512  ;;  %p842_p13 = pneg %p1110_p11 }
  0x19   : > { %p841_p12 = scmp.ne.s32.totalorder %s1337_s2, %s840_s29  ;;  %p847_p5 = scmp.lt.u32.totalorder %s840_s29, %s1337_s2 }
  0x1b   : > { %p843_p0 = pnand %p842_p13, %p841_p12 }
  0x1d   : > { %p844_p3 = pneg %p843_p0 }
  0x1f   : > { %p849_p7 = pnand %p847_p5, %p844_p3 }
  0x21   : > { %852 = shalt.err (!%p849_p7)
}
  0x22   : > { %s853_s7 = scalar_lea.vmem %s164_s24, 512  ;;  %p861_p2 = scmp.lt.s32.totalorder %s164_s24, %s164_s24 }
  0x23   : > { %p854_p9 = scmp.ne.s32.totalorder %s164_s24, %s853_s7  ;;  %p862_p6 = scmp.lt.s32.totalorder %s853_s7, %s853_s7 }
  0x25   : > { %p856_p10 = pnand %p854_p9, %p842_p13  ;;  %p863_p4 = por %p862_p6, %p861_p2 }
  0x27   : > { %p857_p1 = pneg %p856_p10 }
  0x29   : > { %p864_p8 = pnand %p863_p4, %p857_p1 }
  0x2b   : > { %867 = shalt.err (!%p864_p8)
}
  0x2c   : > { %s1021_s8 = smov 128   ;;  %s1022_s9 = smov 8  }
  0x2d   : > { %760 = dma.hbm_to_vmem [thread:$0]  (!%p1110_p11), %s1337_s2, 512, %s164_s24, [#allocation10], %s1021_s8, %s1021_s8, %s1022_s9  }
  0x2e   : > { %p43_p1 = scmp.ge.s32.totalorder %s41_s26, 2  ;;  %s50_s19 = sadd.s32 1, %s1006_s14 }
  0x2f   : > { %p57_p2 = scmp.ne.s32.totalorder %s1006_s14, %s1002_s13  ;;  %p58_p4 = scmp.eq.s32.totalorder %s1018_s17, 0 }
  0x30   : > { %s1357_s26 = smov (%p43_p1, %s41_s26), 0  ;;  %p1340_p8 = scmp.eq.s32.totalorder %s1082_s18, 1 }
  0x31   : > { %1338 = sst [smem:[#allocation17_spill]] %s1357_s26  ;;  %p1137_p6 = por %p58_p4, %p57_p2 }
  0x32   : > { %p1143_p10 = por %p1340_p8, %p57_p2  ;;  %s45_s27 = ssub.s32 %s1014_s16, %s1357_s26 }
  0x33   : > { %p773_p11 = scmp.lt.s32.totalorder %s1018_s17, 2  ;;  %p48_p12 = scmp.eq.s32.totalorder %s45_s27, 0 }
  0x34   : > { %s1341_s25 = scalar_select %p1143_p10, 1, 0 }
  0x35   : > { %s177_s24 = sand.u32 1, %s1006_s14   ;;  %s693_s30 = sshll.u32 %s1014_s16, 7 }
  0x36   : > { %s1151_s28 = sshll.u32 %s177_s24, 3  ;;  %s1160_s6 = scalar_lea.hbm %s1323_s0, %s693_s30 }
  0x37   : > { %s1154_s29 = scalar_select %p48_p12, %s1006_s14, %s50_s19  }
  0x38   : > { %s181_s7 = scalar_lea.vmem [#allocation6], %s1151_s28  ;;  %p1167_p13 = pnand %p773_p11, %p1137_p6 }
  0x39   : > { %s189_s8 = sshll.u32 %s181_s7, 4  ;;  %s1174_s19 = scalar_lea.hbm %s1324_s1, %s693_s30  ;;  %s1163_s8 = int_to_ptr.vmem [resolvable:$true] %s189_s8 }
  0x3a   : > { %s196_s27 = sand.u32 1, %s1018_s17   ;;  %s178_s4 = scalar_lea.sflag [#allocation7], %s177_s24 }
  0x3b   : > { %s868_s5 = scalar_lea.hbm %s1160_s6, 128  ;;  %p870_p3 = pneg %p1167_p13 }
  0x3c   : > { %p869_p0 = scmp.ne.s32.totalorder %s1160_s6, %s868_s5  ;;  %s873_s2 = scalar_lea.hbm %s1323_s0, 256 }
  0x3d   : > { %p874_p9 = scmp.lt.u32.totalorder %s1160_s6, %s1323_s0  ;;  %p875_p1 = scmp.lt.u32.totalorder %s873_s2, %s868_s5 }
  0x3e   : > { %p871_p5 = pnand %p870_p3, %p869_p0  ;;  %p877_p4 = scmp.lt.u32.totalorder %s868_s5, %s1160_s6 }
  0x3f   : > { %p876_p2 = por %p875_p1, %p874_p9 }
  0x40   : > { %p872_p7 = pneg %p871_p5 }
  0x41   : > { %p878_p6 = por %p877_p4, %p876_p2 }
  0x43   : > { %p879_p8 = pnand %p878_p6, %p872_p7 }
  0x45   : > { %882 = shalt.err (!%p879_p8)
}
  0x46   : > { %s883_s24 = scalar_lea.vmem %s1163_s8, 128  ;;  %s1023_s30 = smov [#allocation6]  }
  0x47   : > { %p884_p11 = scmp.ne.s32.totalorder %s1163_s8, %s883_s24  ;;  %s888_s11 = sshll.u32 %s1023_s30, 4  ;;  %s889_s11 = int_to_ptr.vmem [resolvable:$false] %s888_s11 }
  0x48   : > { %s890_s26 = scalar_lea.vmem %s889_s11, 256  ;;  %p891_p5 = scmp.lt.s32.totalorder %s1163_s8, %s889_s11 }
  0x49   : > { %p886_p12 = pnand %p884_p11, %p870_p3  ;;  %p892_p9 = scmp.lt.s32.totalorder %s890_s26, %s883_s24 }
  0x4b   : > { %p887_p0 = pneg %p886_p12  ;;  %p893_p1 = por %p892_p9, %p891_p5 }
  0x4d   : > { %p894_p2 = pnand %p893_p1, %p887_p0 }
  0x4f   : > { %897 = shalt.err (!%p894_p2)
}
  0x50   : > { %764 = dma.hbm_to_vmem [thread:$0]  (!%p1167_p13), %s1160_s6, 128, %s1163_s8, %s178_s4  }
  0x51   : > { %s200_s2 = scalar_lea.vmem [#allocation9], %s1151_s28  ;;  %s197_s23 = scalar_lea.sflag [#allocation10], %s196_s27 }
  0x52   : > { %s208_s5 = sshll.u32 %s200_s2, 4  ;;  %s898_s7 = scalar_lea.hbm %s1174_s19, 128  ;;  %s209_s5 = int_to_ptr.vmem [resolvable:$true] %s208_s5 }
  0x53   : > { %p899_p7 = scmp.ne.s32.totalorder %s1174_s19, %s898_s7  ;;  %s903_s30 = scalar_lea.hbm %s1324_s1, 256 }
  0x54   : > { %p904_p8 = scmp.lt.u32.totalorder %s1174_s19, %s1324_s1  ;;  %p905_p11 = scmp.lt.u32.totalorder %s903_s30, %s898_s7 }
  0x55   : > { %p901_p4 = pnand %p899_p7, %p870_p3  ;;  %p907_p0 = scmp.lt.u32.totalorder %s898_s7, %s1174_s19 }
  0x56   : > { %p906_p12 = por %p905_p11, %p904_p8 }
  0x57   : > { %p902_p6 = pneg %p901_p4 }
  0x58   : > { %p908_p5 = por %p907_p0, %p906_p12 }
  0x5a   : > { %p909_p9 = pnand %p908_p5, %p902_p6 }
  0x5c   : > { %912 = shalt.err (!%p909_p9)
}
  0x5d   : > { %s913_s28 = scalar_lea.vmem %s209_s5, 128  ;;  %s1024_s6 = smov [#allocation9]  }
  0x5e   : > { %p914_p1 = scmp.ne.s32.totalorder %s209_s5, %s913_s28  ;;  %s918_s8 = sshll.u32 %s1024_s6, 4  ;;  %s919_s8 = int_to_ptr.vmem [resolvable:$false] %s918_s8 }
  0x5f   : > { %s920_s27 = scalar_lea.vmem %s919_s8, 256  ;;  %p921_p4 = scmp.lt.s32.totalorder %s209_s5, %s919_s8 }
  0x60   : > { %p916_p2 = pnand %p914_p1, %p870_p3  ;;  %p922_p10 = scmp.lt.s32.totalorder %s920_s27, %s913_s28 }
  0x62   : > { %p917_p7 = pneg %p916_p2  ;;  %p923_p8 = por %p922_p10, %p921_p4 }
  0x64   : > { %p924_p11 = pnand %p923_p8, %p917_p7 }
  0x66   : > { %927 = shalt.err (!%p924_p11)
}
  0x67   : > { %767 = dma.hbm_to_vmem [thread:$0]  (!%p1167_p13), %s1174_s19, 128, %s209_s5, %s197_s23  }
  0x68   : > { %p1343_p6 = scmp.ne.s32.totalorder %s1335_s22, 0 }
  0x69   : > { %s1227_s4 = sand.u32 (!%p1343_p6), 1, %s1002_s13   ;;  %p1344_p10 = scmp.ne.s32.totalorder (!%p1343_p6), %s1333_s20, 0 }
  0x6a   : > { %217 = sbr.rel (%p1343_p6) target bundleno = 1278 (0x4fe), region = 32  ;;  %s1230_s2 = sshll.u32 (!%p1343_p6), %s1227_s4, 3 }
  0x6b   : > { %s220_s7 = scalar_lea.sflag (!%p1343_p6), [#allocation7], %s1227_s4  ;;  %s223_s10 = scalar_lea.vmem (!%p1343_p6), [#allocation6], %s1230_s2 }
  0x71   : > { %981 = dma.done.wait (%p1344_p10), %s220_s7, 128  }
  0x72   : > { %983 = vsyncadd (%p1344_p10), %s220_s7, 4294967168  ;;  %s228_s22 = sand.u32 1, %s1082_s18   ;;  %s232_s19 = scalar_lea.vmem [#allocation9], %s1230_s2 }
  0x73   : > { %s229_s9 = scalar_lea.sflag [#allocation10], %s228_s22 }
  0x74   : > { %985 = dma.done.wait (%p1344_p10), %s229_s9, 128  }
  0x75   : > { %987 = vsyncadd (%p1344_p10), %s229_s9, 4294967168  ;;  %p1345_p13 = scmp.eq.s32.totalorder %s1082_s18, 0 }
  0x77   : > { %989 = dma.done.wait (%p1345_p13), [#allocation10], 512   ;;  %p1346_p3 = pmov %p1345_p13 }
  0x78   : > { %v1025_v0 = vmov 0.0   ;;  %vm1026_vm0 = vmmov 0   ;;  %v338_v1 = vld [vmem:[#allocation11] sm:$0xff]  ;;  %v339_v2 = vld [vmem:[#allocation11 + $0x8] sm:$0xff]  ;;  %v340_v3 = vld [vmem:[#allocation11 + $0x10] sm:$0xff]  ;;  %s1027_s20 = smov 112   ;;  %v446_v28 = vlaneseq }
  0x79   : > { %991 = vsyncadd (%p1346_p3), [#allocation10], 4294966784  ;;  %719 = vmatprep.subr.bf16.mxu0 %v1025_v0  ;;  %727 = vmatprep.subr.bf16.mxu1 %v1025_v0  ;;  %v342_v4 = vpack.c.bf16 %v339_v2, %v338_v1  ;;  %v341_v5 = vld [vmem:[#allocation11 + $0x18] sm:$0xff]  ;;  %v276_v7 = vld [vmem:[%s223_s10] sm:$0xff]  ;;  %vm284_vm1 = vcmask 261120   ;;  %vm274_vm2 = vcmask 130048  }
  0x7a   : > { %723 = vmatprep.mubr.msk.bf16.mxu0 %vm1026_vm0, %v1025_v0  ;;  %731 = vmatprep.mubr.msk.bf16.mxu1 %vm1026_vm0, %v1025_v0  ;;  %v343_v6 = vpack.c.bf16 %v341_v5, %v340_v3  ;;  %v277_v8 = vpack.c.bf16 %v276_v7, %v276_v7  ;;  %275 = vst.msk [vmem:[#allocation5] sm:$0xff] %vm274_vm2, %v1025_v0  ;;  %v336_v10 = vld [vmem:[%s232_s19] sm:$0xff]  ;;  %vm329_vm3 = vcmask 125952   ;;  %vm271_vm4 = vcmask 7168   ;;  %s706_s18 = sshll.u32 %s1010_s15, 7  ;;  %s263_s5 = scalar_lea.vmem [#allocation12], %s1230_s2 }
  0x7b   : > { %346 = vrot.lane.b32.xlu0 %v342_v4, %s1027_s20  ;;  %720 = vmatpush3.bf16.msra.mxu0 %v342_v4  ;;  %v337_v12 = vpack.c.bf16 %v336_v10, %v336_v10  ;;  %v1028_v25 = vmov -inf   ;;  %273 = vst.msk [vmem:[#allocation4] sm:$0xff] %vm271_vm4, %v1025_v0  ;;  %vm495_vm5 = vcmask 1043456   ;;  %v447_v29 = vshrl.u32 %v446_v28, 7  ;;  %s571_s23 = sshll.u32 %s263_s5, 4  ;;  %s1273_s11 = scalar_lea.hbm %s1326_s3, %s706_s18  ;;  %s1275_s23 = int_to_ptr.vmem [resolvable:$true] %s571_s23 }
  0x7c   : > { %721 = vmatprep.subr.bf16.mxu0 %v1025_v0  ;;  %272 = vst.msk [vmem:[#allocation3] sm:$0xff] %vm271_vm4, %v1028_v25  ;;  %v451_v30 = vand.u32 127, %v446_v28  ;;  %vm457_vm7 = vcmask 64512   ;;  %v1029_v38 = vmov 0   ;;  %s557_s26 = scalar_lea.sflag [#allocation8], %s1227_s4  ;;  %s928_s28 = scalar_lea.vmem %s1275_s23, 128 }
  0x7d   : > { %832 = vset.pattern.permute.xlu1 %v1029_v38  ;;  %833 = vset.pattern.permute.xlu0 %v1029_v38  ;;  %p929_p12 = scmp.ne.s32.totalorder %s1275_s23, %s928_s28  ;;  %p1347_p0 = scmp.ne.s32.totalorder %s1341_s25, 0 }
  0x7e   : > { %vm454_vm6 = vcmp.le.s32.totalorder %v451_v30, %v447_v29  ;;  %s1030_s15 = smov [#allocation12]  }
  0x7f   : > { %348 = vrot.lane.b32.xlu0 %v343_v6, %s1027_s20  ;;  %722 = vmatpush3.bf16.msra.mxu0 %v343_v6  ;;  %p930_p5 = pnand %p929_p12, %p1347_p0  ;;  %s932_s6 = sshll.u32 %s1030_s15, 4  ;;  %s933_s6 = int_to_ptr.vmem [resolvable:$false] %s932_s6 }
  0x80   : > { %735 = vmatprep.subr.bf16.mxu0 %v1025_v0  ;;  %s934_s8 = scalar_lea.vmem %s933_s6, 256  ;;  %p935_p1 = scmp.lt.s32.totalorder %s1275_s23, %s933_s6 }
  0x81   : > { %v481_v57 = vld [vmem:[#allocation5] sm:$0xff]  ;;  %p931_p9 = pneg %p930_p5  ;;  %p936_p2 = scmp.lt.s32.totalorder %s934_s8, %s928_s28 }
  0x82   : > { %724 = vmatmul.mubr.msk.bf16.vlgmr.msra.gmra.mrb[0].mxu0 %vm284_vm1, %v277_v8  ;;  %v473_v51 = vld [vmem:[#allocation4] sm:$0xff] }
  0x83   : > { %737 = vmatprep.mubr.msk.bf16.mxu0 %vm1026_vm0, %v1025_v0  ;;  %v456_v39 = vld [vmem:[#allocation3] sm:$0xff]  ;;  %p937_p7 = por %p936_p2, %p935_p1 }
  0x85   : > { %p938_p4 = pnand %p937_p7, %p931_p9 }
  0xed   : > { %v347_v9 = vpop.permute.xlu0 %346 }
  0xee   : > { %728 = vmatpush3.bf16.msra.mxu1 %v347_v9 }
  0xef   : > { %729 = vmatprep.subr.bf16.mxu1 %v1025_v0 }
  0xf1   : > { %v349_v11 = vpop.permute.xlu0 %348 }
  0xf2   : > { %730 = vmatpush3.bf16.msra.mxu1 %v349_v11 }
  0xf3   : > { %741 = vmatprep.subr.bf16.mxu1 %v1025_v0 }
  0xf5   : > { %732 = vmatmul.mubr.msk.bf16.vlgmr.msra.gmra.mrb[0].mxu1 %vm284_vm1, %v337_v12 }
  0xf6   : > { %743 = vmatprep.mubr.msk.bf16.mxu1 %vm1026_vm0, %v1025_v0 }
 0x155   : > { %v322_v13 = vpop.f32.mrb[0].mxu0 }
 0x156   : > { %v328_v14 = vpack.c.bf16 %v322_v13, %v322_v13  ;;  %v725_v15 = vpop.f32.mrb[1].mxu0 }
 0x157   : > { %v325_v16 = vpop.f32.mrb[2].mxu0 }
 0x158   : > { %330 = vst.msk [vmem:[#allocation2] sm:$0xf] %vm329_vm3, %v328_v14  ;;  %v726_v17 = vpop.f32.mrb[3].mxu0 }
 0x15f   : > { %v397_v24 = vld [vmem:[#allocation2] sm:$0xf] }
 0x1c8   : > { %v390_v18 = vpop.f32.mrb[0].mxu1 }
 0x1c9   : > { %v396_v19 = vpack.c.bf16 %v390_v18, %v390_v18  ;;  %v733_v20 = vpop.f32.mrb[1].mxu1 }
 0x1ca   : > { %v393_v21 = vpop.f32.mrb[2].mxu1 }
 0x1cb   : > { %v403_v22 = vsel %vm274_vm2, %v396_v19, 0  ;;  %490 = vrot.lane.b32.xlu0 %v396_v19, %s1027_s20  ;;  %v734_v23 = vpop.f32.mrb[3].mxu1 }
 0x1cc   : > { %736 = vmatpush3.bf16.xpose.msra.mxu0 %v403_v22 }
 0x1d3   : > { %738 = vmatmul.mubr.msk.bf16.vlgmr.msra.gmra.mrb[4].mxu0 %vm274_vm2, %v397_v24 }
 0x23d   : > { %v491_v26 = vpop.permute.xlu0 %490 }
 0x23e   : > { %v497_v27 = vsel %vm495_vm5, %v491_v26, 0 }
 0x23f   : > { %742 = vmatpush3.bf16.msra.mxu1 %v497_v27 }
 0x2a6   : > { %v439_v31 = vpop.f32.mrb[4].mxu0 }
 0x2a7   : > { %v445_v32 = vmul.f32 0.17677669, %v439_v31  ;;  %v739_v33 = vpop.f32.mrb[5].mxu0 }
 0x2a8   : > { %v442_v34 = vpop.f32.mrb[6].mxu0 }
 0x2a9   : > { %v740_v35 = vpop.f32.mrb[7].mxu0  ;;  %v455_v36 = vsel %vm454_vm6, %v445_v32, -1e+30 }
 0x2aa   : > { %v458_v37 = vsel %vm457_vm7, %v455_v36, -inf }
 0x2ab   : > { %459 = vmax.xlane.f32.xlu1 %v458_v37 }
 0x338   : > { %v460_v40 = vpop.xlane.xlu1 %459 }
 0x339   : > { %v461_v41 = vmax.f32 %v456_v39, %v460_v40 }
 0x33b   : > { %v462_v42 = vsub.f32 %v456_v39, %v461_v41  ;;  %541 = vst.msk [vmem:[#allocation3] sm:$0xff] %vm271_vm4, %v461_v41  ;;  %467 = vperm.xlu1 %832, %v461_v41  }
 0x33d   : > { %v463_v43 = vmul.f32 1.442695, %v462_v42 }
 0x33f   : > { %834 = vpow2.f32 %v463_v43 }
 0x349   : > { %v835_v44 = vpop.eup %834 }
 0x34a   : > { %484 = vperm.xlu1 %832, %v835_v44   ;;  %v474_v52 = vmul.f32 %v835_v44, %v473_v51 }
 0x3ba   : > { %v468_v45 = vpop.permute.xlu1 %467 }
 0x3bb   : > { %v470_v46 = vsub.f32 %v455_v36, %v468_v45 }
 0x3bd   : > { %v471_v47 = vmul.f32 1.442695, %v470_v46 }
 0x3bf   : > { %836 = vpow2.f32 %v471_v47 }
 0x3c9   : > { %v837_v48 = vpop.eup %836  ;;  %v485_v58 = vpop.permute.xlu1 %484 }
 0x3ca   : > { %v475_v49 = vsel %vm457_vm7, %v837_v48, 0.0  ;;  %v488_v50 = vpack.c.bf16 %v837_v48, %v837_v48  ;;  %v487_v59 = vmul.f32 %v485_v58, %v481_v57 }
 0x3cb   : > { %476 = vadd.xlane.f32.xlu0 %v475_v49 }
 0x3cc   : > { %744 = vmatmul.mubr.msk.bf16.vlgmr.msra.gmra.mrb[4].mxu1 %vm457_vm7, %v488_v50 }
 0x458   : > { %v477_v53 = vpop.xlane.xlu0 %476 }
 0x459   : > { %v478_v54 = vadd.f32 %v477_v53, %v474_v52 }
 0x45b   : > { %480 = vst.msk [vmem:[#allocation4] sm:$0xff] %vm271_vm4, %v478_v54 }
 0x462   : > { %v545_v55 = vld [vmem:[#allocation4] sm:$0xff] }
 0x463   : > { %838 = vrcp.f32 %v545_v55 }
 0x46d   : > { %v839_v56 = vpop.eup %838 }
 0x46e   : > { %550 = vperm.xlu1 %832, %v839_v56  }
 0x49f   : > { %v533_v60 = vpop.f32.mrb[4].mxu1 }
 0x4a0   : > { %v539_v61 = vadd.f32 %v533_v60, %v487_v59  ;;  %v745_v62 = vpop.f32.mrb[5].mxu1 }
 0x4a1   : > { %v536_v63 = vpop.f32.mrb[6].mxu1 }
 0x4a2   : > { %540 = vst.msk [vmem:[#allocation5] sm:$0xff] %vm274_vm2, %v539_v61  ;;  %v746_v0 = vpop.f32.mrb[7].mxu1 }
 0x4a9   : > { %v547_v1 = vld [vmem:[#allocation5] sm:$0xff] }
 0x4ed   : > { %v551_v2 = vpop.permute.xlu1 %550 }
 0x4ee   : > { %v553_v3 = vmul.f32 %v551_v2, %v547_v1 }
 0x4f0   : > { %555 = vst.msk [vmem:[%s263_s5] sm:$0xff] %vm274_vm2, %v553_v3 }
 0x4f1   : > { %941 = shalt.err (!%p938_p4)
}
 0x4f2   : > { %s942_s27 = scalar_lea.hbm %s1273_s11, 128  ;;  %s946_s7 = scalar_lea.hbm %s1326_s3, 256 }
 0x4f3   : > { %p943_p8 = scmp.ne.s32.totalorder %s1273_s11, %s942_s27  ;;  %p947_p10 = scmp.lt.u32.totalorder %s1273_s11, %s1326_s3 }
 0x4f4   : > { %p948_p13 = scmp.lt.u32.totalorder %s946_s7, %s942_s27  ;;  %p950_p12 = scmp.lt.u32.totalorder %s942_s27, %s1273_s11 }
 0x4f5   : > { %p944_p11 = pnand %p943_p8, %p1347_p0 }
 0x4f6   : > { %p949_p3 = por %p948_p13, %p947_p10 }
 0x4f7   : > { %p945_p6 = pneg %p944_p11 }
 0x4f8   : > { %p951_p5 = por %p950_p12, %p949_p3 }
 0x4fa   : > { %p952_p9 = pnand %p951_p5, %p945_p6 }
 0x4fc   : > { %955 = shalt.err (!%p952_p9)
}
 0x4fd   : > { %755 = dma.vmem_to_hbm [thread:$0]  (%p1347_p0), %s1275_s23, 128, %s1273_s11, %s557_s26  }
 0x4fe PF: > { %s583_s9 = sand.u32 1, %s998_s12   ;;  %p1348_p1 = scmp.ne.s32.totalorder %s1334_s21, 0 }
 0x4ff   : > { %p1349_p2 = scmp.ge.s32.totalorder %s1018_s17, 2  ;;  %s584_s19 = scalar_lea.sflag [#allocation8], %s583_s9 }
 0x501   : > { %p769_p7 = pnand %p1349_p2, %p1348_p1 }
 0x503   : > { %993 = dma.done.wait (!%p769_p7), %s584_s19, 128  }
 0x504   : > { %995 = vsyncadd (!%p769_p7), %s584_s19, 4294967168  ;;  %s22_s17 = sadd.s32 1, %s1018_s17   ;;  %s1350_s25 = sld [smem:[#allocation17_spill]] }
 0x505   : > { %p19_p4 = scmp.ge.s32.totalorder %s22_s17, 4   ;;  %s1351_s12 = smov %s1002_s13 }
 0x506   : > { %s1352_s13 = smov %s1006_s14  ;;  %s1353_s14 = smov %s1154_s29 }
 0x507   : > { %s1354_s15 = smov %s1014_s16  ;;  %21 = sbr.rel (!%p19_p4) target bundleno = 10 (0xa), region = 106 }
 0x50a   : > { %s1355_s16 = smov %s1350_s25 }
 0x50e   :  { %589 = vsyncpa [#allocation7], 1 }
 0x50f   :  { %591 = vsyncpa [#allocation7 + $0x1], 1 }
 0x510   :  { %592 = vsyncpa [#allocation10], 1 }
 0x511   :  { %594 = vsyncpa [#allocation10 + $0x1], 1 }
 0x512   :  { %595 = vsyncpa [#allocation8], 1 }
 0x513   :  { %597 = vsyncpa [#allocation8 + $0x1], 1 }

</bundles_post_ra>
